<compile_context>
chip_gen: v5e
topology: v5e:2x2
jax: 0.10.0
libtpu: 0.0.40
codegen_flags: <defaults>
</compile_context>

<pallas_src>
import jax
import jax.numpy as jnp
from jax import lax
from jax.experimental import pallas as pl
from jax.experimental.pallas import tpu as pltpu

EPS = 1e-5  # torch.nn.LayerNorm default

# Per-step x-tile budget in bytes.  Input + output are each double-buffered,
# so VMEM usage ~ 4x this; 8 MiB keeps us well under v7x's 64 MiB physical
# VMEM (and trivially under v6e/v5e's 128 MiB) with headroom.
_TILE_BUDGET_BYTES = 8 * 1024 * 1024
_VMEM_LIMIT_BYTES = 48 * 1024 * 1024  # explicit: above the 16/32 MiB scoped defaults


def my_layernorm_kernel(x_ref, gamma_ref, o_ref):
    # x_ref: (Bt, L, C) slab resident in VMEM; gamma_ref: (1, C) shared.
    x = x_ref[...].astype(jnp.float32)

    # --- LayerNorm statistics over the channel dim (centered form: more
    #     numerically stable; XLU is not the binding slot for this mem-bound
    #     kernel, so fusing into E[x^2]-E[x]^2 buys nothing). ---
    mean = jnp.mean(x, axis=-1, keepdims=True)          # (Bt, L, 1)
    xc = x - mean
    var = jnp.mean(xc * xc, axis=-1, keepdims=True)     # (Bt, L, 1)
    norm = xc * lax.rsqrt(var + EPS)                    # (Bt, L, C)

    # --- subtract the sequence-mean of the normalized signal; beta cancels,
    #     gamma is applied once at the end. ---
    centered = norm - jnp.mean(norm, axis=1, keepdims=True)   # (Bt, L, C)
    gamma = gamma_ref[...].astype(jnp.float32)                # (1, C) -> broadcast
    o_ref[...] = (centered * gamma).astype(o_ref.dtype)


def _pick_batch_tile(B, bytes_per_batch):
    """Largest divisor of B whose (Bt, L, C) slab fits the tile budget.

    When B > 1 we cap Bt at B//2 so the grid has >= 2 steps and both v7x
    TensorCores can be kept busy via the 'parallel' batch axis (on v5e/v6e
    this cap is harmless).
    """
    max_bt = B if B == 1 else max(1, B // 2)
    for d in range(max_bt, 0, -1):
        if B % d == 0 and d * bytes_per_batch <= _TILE_BUDGET_BYTES:
            return d
    return 1


def my_layernorm(x, gamma, beta=None):
    """x: (B, L, C); gamma, beta: (C,).  beta cancels algebraically and is unused."""
    del beta  # exact cancellation: out = gamma * (norm - mean_L(norm))
    B, L, C = x.shape
    # NOTE: best throughput when C is a multiple of 128 (lane-dense stores).
    # For L*C slabs that exceed the tile budget, a two-sweep tiled-L design
    # with a (1, 1, C) accumulator would be needed (not required at these sizes).
    bytes_per_batch = L * C * x.dtype.itemsize
    bt = _pick_batch_tile(B, bytes_per_batch)

    gamma2 = gamma.reshape(1, C)

    return pl.pallas_call(
        my_layernorm_kernel,
        out_shape=jax.ShapeDtypeStruct((B, L, C), x.dtype),
        grid_spec=pltpu.PrefetchScalarGridSpec(
            num_scalar_prefetch=0,
            grid=(B // bt,),
            in_specs=[
                pl.BlockSpec((bt, L, C), lambda b: (b, 0, 0)),  # x slab (Bt batches/step)
                pl.BlockSpec((1, C), lambda b: (0, 0)),          # gamma (shared)
            ],
            out_specs=pl.BlockSpec((bt, L, C), lambda b: (b, 0, 0)),
        ),
        compiler_params=pltpu.CompilerParams(
            dimension_semantics=("parallel",),        # batch blocks are independent
            vmem_limit_bytes=_VMEM_LIMIT_BYTES,       # above 16/32 MiB scoped defaults
        ),
    )(x, gamma2)


def my_layernorm_ref(x, gamma, beta):
    """Pure-JAX reference mirroring the PyTorch module (keeps beta explicitly)."""
    xf = x.astype(jnp.float32)
    mean = jnp.mean(xf, axis=-1, keepdims=True)
    var = jnp.mean((xf - mean) ** 2, axis=-1, keepdims=True)
    x_hat = (xf - mean) / jnp.sqrt(var + EPS) * gamma + beta
    bias = jnp.mean(x_hat, axis=1, keepdims=True)
    return (x_hat - bias).astype(x.dtype)


if __name__ == "__main__":
    # Small but TPU-friendly shapes: C=128 (lane-dense, realistic d_model),
    # L=24 (multiple of 8 sublanes for f32), B=4 (grid of 2 parallel steps).
    B, L, C = 4, 24, 128
    key = jax.random.PRNGKey(0)
    kx, kg, kb = jax.random.split(key, 3)

    x = jax.random.normal(kx, (B, L, C), dtype=jnp.float32)
    # Perturbed affine params so both gamma scaling and the (cancelled) beta
    # path of the reference are exercised.
    gamma = 1.0 + 0.1 * jax.random.normal(kg, (C,), dtype=jnp.float32)
    beta = 0.1 * jax.random.normal(kb, (C,), dtype=jnp.float32)

    out = my_layernorm(x, gamma, beta)
    jax.block_until_ready(out)

    ref = my_layernorm_ref(x, gamma, beta)
    assert out.shape == (B, L, C)
    assert jnp.allclose(out, ref, atol=1e-5, rtol=1e-5), "mismatch vs reference"

    print("KERNEL_OK")
</pallas_src>

<mosaic_0001>
module attributes {stable_mosaic.version = 11 : i64} {
  func.func @my_layernorm_kernel(%arg0: i32, %arg1: memref<2x24x128xf32, #tpu.memory_space<vmem>>, %arg2: memref<1x128xf32, #tpu.memory_space<vmem>>, %arg3: memref<2x24x128xf32, #tpu.memory_space<vmem>>) attributes {dimension_semantics = [#tpu.dimension_semantics<parallel>], iteration_bounds = array<i64: 2>, scalar_prefetch = 0 : i64, scratch_operands = 0 : i64, tpu.core_type = #tpu.core_type<tc>, window_params = [{transform_indices = @transform_0, window_bounds = array<i64: 2, 24, 128>}, {pipeline_mode = #tpu.pipeline_mode<synchronous>, transform_indices = @transform_1, window_bounds = array<i64: 1, 128>}, {transform_indices = @transform_2, window_bounds = array<i64: 2, 24, 128>}]} {
    %c0 = arith.constant 0 : index
    %c0_0 = arith.constant 0 : index
    %c0_1 = arith.constant 0 : index
    %0 = vector.load %arg1[%c0, %c0_0, %c0_1] : memref<2x24x128xf32, #tpu.memory_space<vmem>>, vector<2x24x128xf32>
    %cst = arith.constant dense<0.000000e+00> : vector<2x24xf32>
    %1 = vector.multi_reduction <add>, %0, %cst [2] : vector<2x24x128xf32> to vector<2x24xf32>
    %2 = vector.shape_cast %1 : vector<2x24xf32> to vector<2x24x1xf32>
    %cst_2 = arith.constant 1.280000e+02 : f32
    %3 = vector.broadcast %cst_2 : f32 to vector<2x24x1xf32>
    %4 = arith.divf %2, %3 : vector<2x24x1xf32>
    %5 = vector.broadcast %4 : vector<2x24x1xf32> to vector<2x24x128xf32>
    %6 = arith.subf %0, %5 : vector<2x24x128xf32>
    %7 = arith.mulf %6, %6 : vector<2x24x128xf32>
    %cst_3 = arith.constant dense<0.000000e+00> : vector<2x24xf32>
    %8 = vector.multi_reduction <add>, %7, %cst_3 [2] : vector<2x24x128xf32> to vector<2x24xf32>
    %9 = vector.shape_cast %8 : vector<2x24xf32> to vector<2x24x1xf32>
    %cst_4 = arith.constant 1.280000e+02 : f32
    %10 = vector.broadcast %cst_4 : f32 to vector<2x24x1xf32>
    %11 = arith.divf %9, %10 : vector<2x24x1xf32>
    %cst_5 = arith.constant 9.99999974E-6 : f32
    %12 = vector.broadcast %cst_5 : f32 to vector<2x24x1xf32>
    %13 = arith.addf %11, %12 : vector<2x24x1xf32>
    %14 = math.rsqrt %13 : vector<2x24x1xf32>
    %15 = vector.broadcast %14 : vector<2x24x1xf32> to vector<2x24x128xf32>
    %16 = arith.mulf %6, %15 : vector<2x24x128xf32>
    %cst_6 = arith.constant dense<0.000000e+00> : vector<2x128xf32>
    %17 = vector.multi_reduction <add>, %16, %cst_6 [1] : vector<2x24x128xf32> to vector<2x128xf32>
    %18 = vector.shape_cast %17 : vector<2x128xf32> to vector<2x1x128xf32>
    %cst_7 = arith.constant 2.400000e+01 : f32
    %19 = vector.broadcast %cst_7 : f32 to vector<2x1x128xf32>
    %20 = arith.divf %18, %19 : vector<2x1x128xf32>
    %21 = vector.broadcast %20 : vector<2x1x128xf32> to vector<2x24x128xf32>
    %22 = arith.subf %16, %21 : vector<2x24x128xf32>
    %c0_8 = arith.constant 0 : index
    %c0_9 = arith.constant 0 : index
    %23 = vector.load %arg2[%c0_8, %c0_9] : memref<1x128xf32, #tpu.memory_space<vmem>>, vector<1x128xf32>
    %24 = vector.shape_cast %23 : vector<1x128xf32> to vector<1x1x128xf32>
    %25 = vector.broadcast %24 : vector<1x1x128xf32> to vector<2x24x128xf32>
    %26 = arith.mulf %22, %25 : vector<2x24x128xf32>
    %c0_10 = arith.constant 0 : index
    %c0_11 = arith.constant 0 : index
    %c0_12 = arith.constant 0 : index
    %27 = vector.load %arg3[%c0_10, %c0_11, %c0_12] : memref<2x24x128xf32, #tpu.memory_space<vmem>>, vector<2x24x128xf32>
    tpu.vector_store %arg3[%c0_10, %c0_11, %c0_12], %26 {strides = array<i32>} : memref<2x24x128xf32, #tpu.memory_space<vmem>>, vector<2x24x128xf32>,
    return
  }
  func.func @transform_0(%arg0: i32) -> (i32, i32, i32) {
    %c0_i32 = arith.constant 0 : i32
    %c0_i32_0 = arith.constant 0 : i32
    %c0_i32_1 = arith.constant 0 : i32
    return %arg0, %c0_i32, %c0_i32_0 : i32, i32, i32
  }
  func.func @transform_1(%arg0: i32) -> (i32, i32) {
    %c0_i32 = arith.constant 0 : i32
    %c0_i32_0 = arith.constant 0 : i32
    %c0_i32_1 = arith.constant 0 : i32
    return %c0_i32, %c0_i32_0 : i32, i32
  }
  func.func @transform_2(%arg0: i32) -> (i32, i32, i32) {
    %c0_i32 = arith.constant 0 : i32
    %c0_i32_0 = arith.constant 0 : i32
    %c0_i32_1 = arith.constant 0 : i32
    return %arg0, %c0_i32, %c0_i32_0 : i32, i32, i32
  }
}

</mosaic_0001>

<bundles_post_ra>
// kernel: tpu_custom_call.1
= control target key start
LH: loop header
LB: loop body
LE: loop exit
PB: predicated region body
PF: predicated region fallthrough
CT: control target
= control target key end

     0   :  { %7 = vsyncpa [#allocation3], 0  ;;  %s923_s0 = inlined_call_operand.hbm [shape: f32[4,24,128], index: 0, kind: input, shape index: {}]   ;;  %s924_s1 = inlined_call_operand.hbm [shape: f32[1,128], index: 1, kind: input, shape index: {}]   ;;  %s925_s2 = inlined_call_operand.hbm [shape: f32[4,24,128], index: 2, kind: output, shape index: {}]  }
   0x1   :  { %9 = vsyncpa [#allocation3 + $0x1], 0 }
   0x2   :  { %10 = vsyncpa [#allocation6], 0 }
   0x3   :  { %11 = vsyncpa [#allocation4], 0 }
   0x4   :  { %13 = vsyncpa [#allocation4 + $0x1], 0  ;;  %s714_s9 = smov 0   ;;  %s716_s10 = smov 0  }
   0x5   :  { %s718_s11 = smov 0   ;;  %s720_s12 = smov 0  }
   0x6 LB: > { %s735_s13 = sadd.s32 4294967295, %s690_s12   ;;  %s462_s14 = sadd.s32 4294967294, %s690_s12   ;;  %s690_s12 = sphi %s720_s12, %s938_s12   ;;  %s686_s11 = sphi %s718_s11, %s937_s11   ;;  %s682_s10 = sphi %s716_s10, %s936_s10   ;;  %s678_s9 = sphi %s714_s9, %s935_s9  }
   0x7   : > { %s739_s15 = sadd.s32 1, %s690_s12   ;;  %s26_s16 = sadd.s32 1, %s686_s11 }
   0x8   : > { %s23_s17 = ssub.s32 %s690_s12, %s739_s15  ;;  %p33_p0 = scmp.ne.s32.totalorder %s686_s11, %s682_s10 }
   0x9   : > { %p24_p1 = scmp.eq.s32.totalorder %s23_s17, 0  ;;  %p34_p2 = scmp.eq.s32.totalorder %s690_s12, 0 }
   0xa   : > { %p39_p3 = scmp.ne.s32.totalorder %s682_s10, %s678_s9  ;;  %p40_p4 = scmp.eq.s32.totalorder %s735_s13, 0 }
   0xb   : > { %s751_s18 = scalar_select %p24_p1, %s686_s11, %s26_s16  }
   0xc   : > { %p753_p5 = por %p34_p2, %p33_p0  ;;  %p759_p6 = por %p40_p4, %p39_p3 }
   0xd   : > { %p84_p7 = scmp.eq.s32.totalorder %s735_s13, 1  ;;  %p90_p8 = scmp.eq.s32.totalorder %s462_s14, 1 }
   0xe   : > { %p463_p9 = scmp.ge.s32.totalorder %s690_s12, 1  ;;  %p97_p10 = scmp.lt.s32.totalorder %s690_s12, 3 }
   0xf   : > { %p766_p11 = por %p84_p7, %p33_p0  ;;  %p770_p12 = por %p90_p8, %p39_p3 }
  0x10   : > { %p774_p13 = pnand %p463_p9, %p97_p10  ;;  %s109_s26 = sshll.u32 %s924_s1, 4  ;;  %s110_s26 = int_to_ptr.hbm [resolvable:$true] %s109_s26 }
  0x11   : > { %s692_s27 = smov [#allocation5]   ;;  %p501_p3 = scmp.lt.s32.totalorder %s690_s12, 2 }
  0x12   : > { %p488_p1 = pneg %p774_p13  ;;  %s111_s28 = sshll.u32 %s692_s27, 4  ;;  %s112_s28 = int_to_ptr.vmem [resolvable:$true] %s111_s28 }
  0x13   : > { %s122_s29 = sand.u32 1, %s686_s11   ;;  %p790_p7 = pnand %p501_p3, %p753_p5 }
  0x14   : > { %p489_p2 = pnand %p488_p1, %p40_p4  ;;  %s476_s3 = smul.u32 48, %s122_s29 }
  0x15   : > { %s477_s4 = smul.u32 48, %s690_s12  ;;  %s123_s17 = scalar_lea.sflag [#allocation3], %s122_s29 }
  0x16   : > { %491 = dma.hbm_to_vmem [thread:$0]  (!%p489_p2), %s110_s26, 16, %s112_s28, [#allocation6]  }
  0x17   : > { %s132_s7 = scalar_lea.hbm %s923_s0, %s477_s4  ;;  %s126_s8 = scalar_lea.vmem [#allocation2], %s476_s3 }
  0x18   : > { %s135_s14 = sshll.u32 %s126_s8, 4  ;;  %s133_s16 = sshll.u32 %s132_s7, 4  ;;  %s136_s14 = int_to_ptr.vmem [resolvable:$true] %s135_s14  ;;  %s134_s16 = int_to_ptr.hbm [resolvable:$true] %s133_s16 }
  0x19   : > { %s590_s24 = sshra.s32 %s134_s16, 4  ;;  %p594_p8 = pneg %p790_p7  ;;  %s591_s24 = int_to_ptr.hbm [resolvable:$true] %s590_s24 }
  0x1a   : > { %s592_s19 = scalar_lea.hbm %s591_s24, 48  ;;  %s597_s27 = scalar_lea.hbm %s923_s0, 96 }
  0x1b   : > { %p593_p5 = scmp.ne.s32.totalorder %s591_s24, %s592_s19  ;;  %p598_p1 = scmp.lt.s32.totalorder %s591_s24, %s923_s0 }
  0x1c   : > { %p599_p2 = scmp.lt.s32.totalorder %s597_s27, %s592_s19 }
  0x1d   : > { %p595_p9 = pnand %p594_p8, %p593_p5 }
  0x1e   : > { %p600_p3 = por %p599_p2, %p598_p1 }
  0x1f   : > { %p596_p10 = pneg %p595_p9 }
  0x21   : > { %p601_p0 = pnand %p600_p3, %p596_p10 }
  0x23   : > { %604 = shalt.err (!%p601_p0)
}
  0x24   : > { %s693_s29 = smov 128   ;;  %s694_s3 = smov 8  }
  0x25   : > { %495 = dma.hbm_to_vmem [thread:$0]  (!%p790_p7), %s134_s16, 768, %s136_s14, %s123_s17, %s693_s29, %s693_s29, %s694_s3  }
  0x26   : > { %147 = sbr.rel (%p774_p13) target bundleno = 352 (0x160), region = 28  ;;  %s811_s5 = sand.u32 (!%p774_p13), 1, %s682_s10  }
  0x27   : > { %s478_s6 = smul.u32 (!%p774_p13), 48, %s811_s5  ;;  %s150_s7 = scalar_lea.sflag (!%p774_p13), [#allocation3], %s811_s5 }
  0x29   : > { %s153_s8 = scalar_lea.vmem (!%p774_p13), [#allocation2], %s478_s6 }
  0x2b   : > { %665 = dma.done.wait (%p759_p6), %s150_s7, 768  }
  0x2c   : > { %667 = vsyncadd (%p759_p6), %s150_s7, 4294966528 }
  0x2d   : > { %669 = dma.done.wait (%p40_p4), [#allocation6], 16  }
  0x2e   : > { %671 = vsyncadd (%p40_p4), [#allocation6], 4294967280  ;;  %v185_v0 = vld [vmem:[%s153_s8 + $0x18] sm:$0xff]  ;;  %v184_v1 = vld [vmem:[%s153_s8 + $0x10] sm:$0xff]  ;;  %v695_v6 = vmov 128.0   ;;  %s479_s20 = smul.u32 48, %s735_s13 }
  0x2f   : > { %v182_v2 = vld [vmem:[%s153_s8] sm:$0xff]  ;;  %194 = vadd.xlane.f32.xlu1 %v185_v0  ;;  %192 = vadd.xlane.f32.xlu2 %v184_v1  ;;  %v187_v4 = vld [vmem:[%s153_s8 + $0x28] sm:$0xff]  ;;  %544 = vrcp.f32 %v695_v6  ;;  %s179_s16 = scalar_lea.vmem [#allocation7], %s478_s6  ;;  %s363_s24 = scalar_lea.sflag [#allocation4], %s811_s5 }
  0x30   : > { %188 = vadd.xlane.f32.xlu0 %v182_v2  ;;  %v186_v3 = vld [vmem:[%s153_s8 + $0x20] sm:$0xff]  ;;  %v183_v5 = vld [vmem:[%s153_s8 + $0x8] sm:$0xff]  ;;  %s375_s14 = scalar_lea.hbm %s925_s2, %s479_s20  ;;  %s376_s13 = sshll.u32 %s179_s16, 4  ;;  %s377_s13 = int_to_ptr.vmem [resolvable:$true] %s376_s13 }
  0x31   : > { %s378_s17 = sshll.u32 %s375_s14, 4  ;;  %s640_s28 = scalar_lea.hbm %s925_s2, 96  ;;  %s379_s17 = int_to_ptr.hbm [resolvable:$true] %s378_s17 }
  0x32   : > { %s634_s19 = sshra.s32 %s379_s17, 4  ;;  %s635_s19 = int_to_ptr.hbm [resolvable:$true] %s634_s19 }
  0x33   : > { %s636_s25 = scalar_lea.hbm %s635_s19, 48  ;;  %p641_p0 = scmp.lt.s32.totalorder %s635_s19, %s925_s2 }
  0x34   : > { %p637_p4 = scmp.ne.s32.totalorder %s635_s19, %s636_s25  ;;  %p642_p7 = scmp.lt.s32.totalorder %s640_s28, %s636_s25 }
  0x35   : > { %v545_v7 = vpop.eup %544 }
  0x36   : > { %v201_v8 = vmul.f32 128.0, %v545_v7  ;;  %vm205_vm0 = vweird.f32 %v545_v7  ;;  %p638_p6 = pnand %p637_p4, %p766_p11  ;;  %p643_p5 = por %p642_p7, %p641_p0 }
  0x37   : > { %196 = vadd.xlane.f32.xlu1 %v186_v3  ;;  %198 = vadd.xlane.f32.xlu2 %v187_v4 }
  0x38   : > { %190 = vadd.xlane.f32.xlu0 %v183_v5  ;;  %v202_v9 = vsub.f32 1.0, %v201_v8  ;;  %p639_p13 = pneg %p638_p6 }
  0x3a   : > { %v203_v10 = vmul.f32 %v545_v7, %v202_v9  ;;  %p644_p8 = pnand %p643_p5, %p639_p13 }
  0x3c   : > { %v204_v11 = vadd.f32 %v545_v7, %v203_v10 }
  0x3e   : > { %v206_v12 = vsel %vm205_vm0, %v545_v7, %v204_v11 }
  0xa2   : > { %v195_v13 = vpop.xlane.xlu1 %194  ;;  %v193_v14 = vpop.xlane.xlu2 %192 }
  0xa3   : > { %v210_v15 = vmul.f32 %v206_v12, %v195_v13  ;;  %v189_v16 = vpop.xlane.xlu0 %188  ;;  %v209_v33 = vmul.f32 %v206_v12, %v193_v14 }
  0xa4   : > { %v207_v17 = vmul.f32 %v206_v12, %v189_v16 }
  0xa5   : > { %v825_v18 = vsub.f32 %v185_v0, %v210_v15  ;;  %v845_v35 = vsub.f32 %v184_v1, %v209_v33 }
  0xa6   : > { %v827_v19 = vsub.f32 %v182_v2, %v207_v17 }
  0xa7   : > { %v222_v20 = vmul.f32 %v825_v18, %v825_v18  ;;  %v221_v36 = vmul.f32 %v845_v35, %v845_v35 }
  0xa8   : > { %v219_v21 = vmul.f32 %v827_v19, %v827_v19 }
  0xa9   : > { %231 = vadd.xlane.f32.xlu2 %v222_v20 }
  0xaa   : > { %225 = vadd.xlane.f32.xlu0 %v219_v21  ;;  %v197_v22 = vpop.xlane.xlu1 %196  ;;  %v199_v23 = vpop.xlane.xlu2 %198 }
  0xab   : > { %v211_v24 = vmul.f32 %v206_v12, %v197_v22  ;;  %v212_v25 = vmul.f32 %v206_v12, %v199_v23  ;;  %v191_v26 = vpop.xlane.xlu0 %190 }
  0xac   : > { %v208_v27 = vmul.f32 %v206_v12, %v191_v26 }
  0xad   : > { %v833_v28 = vsub.f32 %v186_v3, %v211_v24  ;;  %v835_v29 = vsub.f32 %v187_v4, %v212_v25 }
  0xae   : > { %v837_v30 = vsub.f32 %v183_v5, %v208_v27  ;;  %v696_v5 = vmov 24.0  }
  0xaf   : > { %v224_v31 = vmul.f32 %v835_v29, %v835_v29  ;;  %v223_v32 = vmul.f32 %v833_v28, %v833_v28 }
  0xb0   : > { %v220_v34 = vmul.f32 %v837_v30, %v837_v30 }
  0xb1   : > { %235 = vadd.xlane.f32.xlu2 %v224_v31 }
  0xb2   : > { %233 = vadd.xlane.f32.xlu0 %v223_v32  ;;  %227 = vadd.xlane.f32.xlu1 %v220_v34 }
  0xba   : > { %229 = vadd.xlane.f32.xlu1 %v221_v36 }
 0x11c   : > { %v232_v37 = vpop.xlane.xlu2 %231 }
 0x11d   : > { %v240_v38 = vmul.f32 %v232_v37, %v206_v12  ;;  %v226_v39 = vpop.xlane.xlu0 %225 }
 0x11e   : > { %v237_v40 = vmul.f32 %v226_v39, %v206_v12 }
 0x11f   : > { %v246_v41 = vadd.f32 1e-05, %v240_v38 }
 0x120   : > { %v849_v42 = vadd.f32 1e-05, %v237_v40 }
 0x121   : > { %546 = vrsqrt.f32 %v246_v41  ;;  %vm285_vm1 = vweird.f32 %v246_v41 }
 0x122   : > { %548 = vrsqrt.f32 %v849_v42  ;;  %vm255_vm14 = vweird.f32 %v849_v42 }
 0x124   : > { %v236_v43 = vpop.xlane.xlu2 %235 }
 0x125   : > { %v242_v44 = vmul.f32 %v236_v43, %v206_v12  ;;  %v228_v45 = vpop.xlane.xlu1 %227  ;;  %v234_v46 = vpop.xlane.xlu0 %233 }
 0x126   : > { %v238_v47 = vmul.f32 %v228_v45, %v206_v12  ;;  %v241_v48 = vmul.f32 %v234_v46, %v206_v12 }
 0x127   : > { %v852_v49 = vpop.eup %546  ;;  %v248_v50 = vadd.f32 1e-05, %v242_v44 }
 0x128   : > { %v280_v51 = vmul.f32 %v852_v49, %v246_v41  ;;  %v244_v52 = vadd.f32 1e-05, %v238_v47  ;;  %v247_v53 = vadd.f32 1e-05, %v241_v48  ;;  %v855_v54 = vpop.eup %548  ;;  %vm286_vm2 = vweird.f32 %v852_v49 }
 0x129   : > { %550 = vrsqrt.f32 %v248_v50  ;;  %v250_v56 = vmul.f32 %v855_v54, %v849_v42  ;;  %vm305_vm3 = vweird.f32 %v248_v50  ;;  %vm287_vm7 = vmor %vm285_vm1, %vm286_vm2  ;;  %vm256_vm10 = vweird.f32 %v855_v54 }
 0x12a   : > { %v281_v55 = vmul.f32 %v852_v49, %v280_v51  ;;  %552 = vrsqrt.f32 %v244_v52  ;;  %vm295_vm5 = vweird.f32 %v247_v53  ;;  %vm265_vm11 = vweird.f32 %v244_v52  ;;  %vm257_vm15 = vmor %vm255_vm14, %vm256_vm10 }
 0x12b   : > { %554 = vrsqrt.f32 %v247_v53  ;;  %v251_v62 = vmul.f32 %v855_v54, %v250_v56 }
 0x12c   : > { %v282_v58 = vmul.f32 0.5, %v281_v55  ;;  %556 = vrcp.f32 %v696_v5 }
 0x12d   : > { %v230_v57 = vpop.xlane.xlu1 %229  ;;  %v252_v8 = vmul.f32 0.5, %v251_v62 }
 0x12e   : > { %v239_v59 = vmul.f32 %v230_v57, %v206_v12  ;;  %v283_v3 = vsub.f32 1.5, %v282_v58 }
 0x12f   : > { %v551_v60 = vpop.eup %550  ;;  %v253_v17 = vsub.f32 1.5, %v252_v8 }
 0x130   : > { %v553_v61 = vpop.eup %552  ;;  %v300_v63 = vmul.f32 %v551_v60, %v248_v50  ;;  %v861_v0 = vadd.f32 1e-05, %v239_v59  ;;  %v284_v12 = vmul.f32 %v852_v49, %v283_v3  ;;  %vm306_vm4 = vweird.f32 %v551_v60 }
 0x131   : > { %v555_v1 = vpop.eup %554  ;;  %v260_v2 = vmul.f32 %v553_v61, %v244_v52  ;;  %vm266_vm8 = vweird.f32 %v553_v61  ;;  %vm868_vm9 = vmor %vm305_vm3, %vm306_vm4  ;;  %v254_v32 = vmul.f32 %v855_v54, %v253_v17 }
 0x132   : > { %v301_v4 = vmul.f32 %v551_v60, %v300_v63  ;;  %v290_v6 = vmul.f32 %v555_v1, %v247_v53  ;;  %558 = vrsqrt.f32 %v861_v0  ;;  %v557_v16 = vpop.eup %556  ;;  %vm296_vm6 = vweird.f32 %v555_v1  ;;  %vm267_vm13 = vmor %vm265_vm11, %vm266_vm8 }
 0x133   : > { %v261_v7 = vmul.f32 %v553_v61, %v260_v2  ;;  %v288_v23 = vsel %vm287_vm7, %v852_v49, %v284_v12  ;;  %v332_v31 = vmul.f32 24.0, %v557_v16  ;;  %vm297_vm12 = vmor %vm295_vm5, %vm296_vm6  ;;  %v258_v44 = vsel %vm257_vm15, %v855_v54, %v254_v32 }
 0x134   : > { %v302_v9 = vmul.f32 0.5, %v301_v4  ;;  %v291_v10 = vmul.f32 %v555_v1, %v290_v6  ;;  %v312_v37 = vmul.f32 %v288_v23, %v825_v18  ;;  %vm275_vm1 = vweird.f32 %v861_v0 }
 0x135   : > { %v262_v11 = vmul.f32 0.5, %v261_v7  ;;  %v333_v45 = vsub.f32 1.0, %v332_v31  ;;  %vm336_vm3 = vweird.f32 %v557_v16 }
 0x136   : > { %v303_v13 = vsub.f32 1.5, %v302_v9  ;;  %v292_v14 = vmul.f32 0.5, %v291_v10 }
 0x137   : > { %v263_v15 = vsub.f32 1.5, %v262_v11  ;;  %v334_v49 = vmul.f32 %v557_v16, %v333_v45 }
 0x138   : > { %v304_v20 = vmul.f32 %v551_v60, %v303_v13  ;;  %v293_v21 = vsub.f32 1.5, %v292_v14  ;;  %v559_v22 = vpop.eup %558 }
 0x139   : > { %v264_v25 = vmul.f32 %v553_v61, %v263_v15  ;;  %v270_v27 = vmul.f32 %v559_v22, %v861_v0  ;;  %vm276_vm0 = vweird.f32 %v559_v22  ;;  %v335_v55 = vadd.f32 %v557_v16, %v334_v49 }
 0x13a   : > { %v294_v26 = vmul.f32 %v555_v1, %v293_v21  ;;  %v308_v33 = vsel %vm868_vm9, %v551_v60, %v304_v20  ;;  %vm277_vm2 = vmor %vm275_vm1, %vm276_vm0 }
 0x13b   : > { %v271_v36 = vmul.f32 %v559_v22, %v270_v27  ;;  %v268_v39 = vsel %vm267_vm13, %v553_v61, %v264_v25  ;;  %v314_v41 = vmul.f32 %v308_v33, %v835_v29  ;;  %v337_v59 = vsel %vm336_vm3, %v557_v16, %v335_v55  ;;  %v543_v61 = vld [vmem:[#allocation5] ss:$0 sm:$0xff] }
 0x13c   : > { %v298_v34 = vsel %vm297_vm12, %v555_v1, %v294_v26  ;;  %v310_v47 = vmul.f32 %v268_v39, %v837_v30 }
 0x13d   : > { %v313_v38 = vmul.f32 %v298_v34, %v833_v28  ;;  %v272_v40 = vmul.f32 0.5, %v271_v36  ;;  %v309_v28 = vmul.f32 %v258_v44, %v827_v19 }
 0x13f   : > { %v323_v43 = vadd.f32 %v313_v38, %v312_v37  ;;  %v273_v46 = vsub.f32 1.5, %v272_v40  ;;  %v315_v51 = vadd.f32 %v310_v47, %v309_v28 }
 0x141   : > { %v324_v18 = vadd.f32 %v323_v43, %v314_v41  ;;  %v274_v48 = vmul.f32 %v559_v22, %v273_v46 }
 0x143   : > { %v325_v42 = vrot.slane %v324_v18, 4  ;;  %v278_v50 = vsel %vm277_vm2, %v559_v22, %v274_v48 }
 0x144   : > { %v311_v52 = vmul.f32 %v278_v50, %v845_v35 }
 0x145   : > { %v326_v29 = vadd.f32 %v325_v42, %v324_v18 }
 0x146   : > { %v316_v54 = vadd.f32 %v315_v51, %v311_v52 }
 0x147   : > { %v327_v53 = vrot.slane %v326_v29, 2 }
 0x148   : > { %v317_v56 = vrot.slane %v316_v54, 4 }
 0x149   : > { %v328_v30 = vadd.f32 %v327_v53, %v326_v29 }
 0x14a   : > { %v318_v58 = vadd.f32 %v317_v56, %v316_v54 }
 0x14b   : > { %v329_v57 = vrot.slane %v328_v30, 1 }
 0x14c   : > { %v319_v60 = vrot.slane %v318_v58, 2 }
 0x14d   : > { %v330_v19 = vadd.f32 %v329_v57, %v328_v30 }
 0x14e   : > { %v320_v63 = vadd.f32 %v319_v60, %v318_v58 }
 0x14f   : > { %v339_v62 = vmul.f32 %v337_v59, %v330_v19 }
 0x150   : > { %v321_v35 = vrot.slane %v320_v63, 1 }
 0x151   : > { %v343_v0 = vsub.f32 %v312_v37, %v339_v62  ;;  %v344_v1 = vsub.f32 %v313_v38, %v339_v62  ;;  %v345_v2 = vsub.f32 %v314_v41, %v339_v62 }
 0x152   : > { %v322_v6 = vadd.f32 %v321_v35, %v320_v63 }
 0x153   : > { %v353_v3 = vmul.f32 %v543_v61, %v343_v0  ;;  %v354_v4 = vmul.f32 %v543_v61, %v344_v1  ;;  %v355_v5 = vmul.f32 %v543_v61, %v345_v2 }
 0x154   : > { %v338_v7 = vmul.f32 %v337_v59, %v322_v6 }
 0x155   : > { %359 = vst [vmem:[%s179_s16 + $0x18] sm:$0xff] %v353_v3 }
 0x156   : > { %360 = vst [vmem:[%s179_s16 + $0x20] sm:$0xff] %v354_v4  ;;  %v340_v8 = vsub.f32 %v309_v28, %v338_v7  ;;  %v341_v9 = vsub.f32 %v310_v47, %v338_v7  ;;  %v342_v10 = vsub.f32 %v311_v52, %v338_v7 }
 0x157   : > { %361 = vst [vmem:[%s179_s16 + $0x28] sm:$0xff] %v355_v5 }
 0x158   : > { %v350_v11 = vmul.f32 %v543_v61, %v340_v8  ;;  %v351_v12 = vmul.f32 %v543_v61, %v341_v9  ;;  %v352_v13 = vmul.f32 %v543_v61, %v342_v10 }
 0x15a   : > { %356 = vst [vmem:[%s179_s16] sm:$0xff] %v350_v11 }
 0x15b   : > { %357 = vst [vmem:[%s179_s16 + $0x8] sm:$0xff] %v351_v12 }
 0x15c   : > { %358 = vst [vmem:[%s179_s16 + $0x10] sm:$0xff] %v352_v13 }
 0x15d   : > { %647 = shalt.err (!%p644_p8)
}
 0x15e   : > { %s697_s3 = smov 128   ;;  %s698_s5 = smov 8  }
 0x15f   : > { %486 = dma.vmem_to_hbm [thread:$0]  (%p766_p11), %s377_s13, 768, %s379_s17, %s363_s24, %s697_s3, %s697_s3, %s698_s5  }
 0x160 PF: > { %s393_s6 = sand.u32 1, %s678_s9   ;;  %p934_p9 = scmp.ge.s32.totalorder %s690_s12, 2 }
 0x161   : > { %s394_s7 = scalar_lea.sflag [#allocation4], %s393_s6 }
 0x162   : > { %p497_p10 = pnand %p934_p9, %p770_p12 }
 0x164   : > { %p498_p1 = pneg %p497_p10 }
 0x166   : > { %673 = dma.done.wait (%p498_p1), %s394_s7, 768  }
 0x167   : > { %675 = vsyncadd (%p498_p1), %s394_s7, 4294966528  ;;  %p16_p2 = scmp.ge.s32.totalorder %s739_s15, 4   ;;  %s935_s9 = smov %s682_s10 }
 0x168   : > { %s936_s10 = smov %s686_s11  ;;  %s937_s11 = smov %s751_s18 }
 0x169   : > { %s938_s12 = smov %s739_s15  ;;  %18 = sbr.rel (!%p16_p2) target bundleno = 6 (0x6), region = 77 }
 0x16e   :  { %400 = vsyncpa [#allocation3], 1 }
 0x16f   :  { %402 = vsyncpa [#allocation3 + $0x1], 1 }
 0x170   :  { %403 = vsyncpa [#allocation6], 1 }
 0x171   :  { %404 = vsyncpa [#allocation4], 1 }
 0x172   :  { %406 = vsyncpa [#allocation4 + $0x1], 1 }

</bundles_post_ra>
